<compile_context>
chip_gen: v6e
topology: v6e:2x2x1
jax: 0.10.0
libtpu: 0.0.40
codegen_flags: <defaults>
</compile_context>

<pallas_src>
from functools import partial
import re

import jax
import jax.numpy as jnp
from jax.experimental import pallas as pl
from jax.experimental.pallas import tpu as pltpu


_LANE = 128


def _round_up(a, b):
    return (a + b - 1) // b * b


def _cdiv(a, b):
    return (a + b - 1) // b


def _tpu_generation():
    """Best-effort TPU generation from device_kind; defaults to 6."""
    try:
        kind = str(jax.devices()[0].device_kind)
    except Exception:
        return 6
    m = re.search(r"(\d+)", kind)
    return int(m.group(1)) if m else 6


def _sublane_multiple(itemsize):
    # f32 -> 8 sublanes, bf16 -> 16, int8/fp8 -> 32 (packed tiling).
    return max(8, 32 // max(itemsize, 1))


def _choose_tiles(N, C, HW, dtype, gen):
    """Pick (tb, tw, vmem_limit_bytes) for block shape (tb, C, tw)."""
    itemsize = jnp.dtype(dtype).itemsize
    c_pad = _round_up(C, _sublane_multiple(itemsize))

    # Per-step HBM slab budget (x.dtype bytes of one (1, C, tw) tile) and lane
    # ceiling.  v7x's ~3.2 TB/s HBM makes per-grid-step overhead significant,
    # so it gets bigger tiles; v5e/v6e are past the roofline knee at 1-2K lanes.
    if gen >= 7:
        slab_budget = 4 * 1024 * 1024
        lane_cap = 4096
        min_steps = 8          # >= 4 pipelined iterations per TensorCore (2 TCs)
    else:
        slab_budget = 2 * 1024 * 1024
        lane_cap = 2048
        min_steps = 6          # enough iterations to hide pipeline prologue/epilogue

    # Lane tile: widest multiple of 128 whose sublane-padded x.dtype slab fits
    # the budget.  If the whole row fits, take it un-split: a full-dim block is
    # always layout-legal even when HW % 128 != 0, and avoids edge masking.
    lanes_fit = max(_LANE, (slab_budget // (c_pad * itemsize)) // _LANE * _LANE)
    if HW <= min(lanes_fit, lane_cap):
        tw = HW
    else:
        tw = min(lanes_fit, lane_cap)   # multiple of 128; edge block is masked

    def total_steps(tw_):
        return N * _cdiv(HW, tw_)

    # If the pipeline is too short, split the spatial axis further -- but only
    # while each step still moves a meaningful amount of HBM data (>=512 KiB).
    while total_steps(tw) < min_steps:
        new_tw = max(_LANE, (tw // 2) // _LANE * _LANE)
        if (new_tw == tw
                or c_pad * new_tw * itemsize < 512 * 1024
                or total_steps(new_tw) <= total_steps(tw)):
            break
        tw = new_tw

    hw_steps = _cdiv(HW, tw)

    # True VMEM footprint for a candidate tb: 2x double-buffered input +
    # 2x double-buffered output (x.dtype, sublane-padded) + ~3 f32 temporaries.
    def footprint(tb_):
        tile_dtype = tb_ * c_pad * tw * itemsize
        tile_f32 = tb_ * c_pad * tw * 4
        return 4 * tile_dtype + 3 * tile_f32

    vmem_target = (40 << 20) if gen >= 7 else (24 << 20)

    # Batch-pack to amortise per-step overhead when HW is small, without
    # shrinking the grid below min_steps or blowing the VMEM / slab budgets.
    tb = 1
    for cand in range(2, N + 1):
        if N % cand:
            continue
        if footprint(cand) > vmem_target:
            break
        if cand * c_pad * tw * itemsize > slab_budget:
            break
        if (N // cand) * hw_steps < min_steps:
            break
        tb = cand

    vmem_limit = int(footprint(tb)) * 2 + (4 << 20)
    vmem_limit = max(vmem_limit, 32 << 20)
    vmem_limit = min(vmem_limit, (48 << 20) if gen >= 7 else (96 << 20))
    return tb, tw, vmem_limit


def _layernorm_kernel(x_ref, g_ref, o_ref, *, eps, inv_c):
    # x_ref: (TB, C, TW) tile, g_ref: (1, C, 1), o_ref: (TB, C, TW)
    x = x_ref[...].astype(jnp.float32)
    mean = jnp.sum(x, axis=1, keepdims=True) * inv_c        # (TB, 1, TW)
    xc = x - mean                                            # computed once, reused
    var = jnp.sum(xc * xc, axis=1, keepdims=True) * inv_c    # biased variance
    g = g_ref[...].astype(jnp.float32)                       # (1, C, 1) broadcast
    y = xc * jax.lax.rsqrt(var + eps) * g                    # rsqrt rides the EUP
    o_ref[...] = y.astype(o_ref.dtype)


def layer_norm(x, g):
    """x: (N, C, H, W), g: (1, C, 1, 1) -> (N, C, H, W)"""
    N, C, H, W = x.shape
    HW = H * W
    eps = 1e-5 if x.dtype == jnp.float32 else 1e-3

    x2 = x.reshape(N, C, HW)              # free: contiguous reshape
    g2 = jnp.asarray(g).reshape(1, C, 1)

    gen = _tpu_generation()
    tb, tw, vmem_limit = _choose_tiles(N, C, HW, x.dtype, gen)
    grid = (N // tb, _cdiv(HW, tw))       # partial edge block handled by Pallas

    itemsize = jnp.dtype(x.dtype).itemsize
    cost = pl.CostEstimate(
        flops=int(7 * N * C * HW),
        transcendentals=int(N * HW),
        bytes_accessed=int(2 * N * C * HW * itemsize
                           + C * jnp.dtype(g2.dtype).itemsize),
    )

    out = pl.pallas_call(
        partial(_layernorm_kernel, eps=eps, inv_c=1.0 / C),
        out_shape=jax.ShapeDtypeStruct((N, C, HW), x.dtype),
        grid=grid,
        in_specs=[
            pl.BlockSpec((tb, C, tw), lambda n, w: (n, 0, w)),
            pl.BlockSpec((1, C, 1), lambda n, w: (0, 0, 0)),
        ],
        out_specs=pl.BlockSpec((tb, C, tw), lambda n, w: (n, 0, w)),
        compiler_params=pltpu.CompilerParams(
            dimension_semantics=("parallel", "parallel"),
            vmem_limit_bytes=vmem_limit,
        ),
        cost_estimate=cost,
    )(x2, g2)

    return out.reshape(N, C, H, W)


def _reference(x, g):
    eps = 1e-5 if x.dtype == jnp.float32 else 1e-3
    mean = jnp.mean(x, axis=1, keepdims=True)
    var = jnp.mean((x - mean) ** 2, axis=1, keepdims=True)
    return (x - mean) * jax.lax.rsqrt(var + eps) * g


if __name__ == "__main__":
    key = jax.random.PRNGKey(0)

    # Main test: small NCHW shape consistent with the module.
    N, C, H, W = 2, 4, 16, 16
    x = jax.random.normal(key, (N, C, H, W), dtype=jnp.float32)
    g = jnp.ones((1, C, 1, 1), dtype=jnp.float32)   # nn.Parameter(torch.ones(1, dim, 1, 1))

    out = jax.block_until_ready(layer_norm(x, g))
    ref = _reference(x, g)
    assert out.shape == (N, C, H, W)
    assert jnp.allclose(out, ref, atol=1e-5, rtol=1e-5), "mismatch vs reference"

    # HW not a multiple of 128, single full-dim spatial block.
    k2 = jax.random.PRNGKey(1)
    x2 = jax.random.normal(k2, (2, 4, 10, 10), dtype=jnp.float32)
    out2 = jax.block_until_ready(layer_norm(x2, g))
    ref2 = _reference(x2, g)
    assert jnp.allclose(out2, ref2, atol=1e-5, rtol=1e-5), "mismatch (small HW path)"

    # HW > lane cap and not a multiple of the tile -> masked partial edge block.
    k3 = jax.random.PRNGKey(2)
    x3 = jax.random.normal(k3, (2, 4, 65, 65), dtype=jnp.float32)
    out3 = jax.block_until_ready(layer_norm(x3, g))
    ref3 = _reference(x3, g)
    assert jnp.allclose(out3, ref3, atol=1e-5, rtol=1e-5), "mismatch (edge-block path)"

    print("KERNEL_OK")
</pallas_src>

<mosaic_0001>
module attributes {stable_mosaic.version = 11 : i64} {
  func.func @_layernorm_kernel(%arg0: i32, %arg1: i32, %arg2: memref<1x4x256xf32, #tpu.memory_space<vmem>>, %arg3: memref<1x4x1xf32, #tpu.memory_space<vmem>>, %arg4: memref<1x4x256xf32, #tpu.memory_space<vmem>>) attributes {dimension_semantics = [#tpu.dimension_semantics<parallel>, #tpu.dimension_semantics<parallel>], iteration_bounds = array<i64: 2, 1>, scalar_prefetch = 0 : i64, scratch_operands = 0 : i64, tpu.core_type = #tpu.core_type<tc>, window_params = [{transform_indices = @transform_0, window_bounds = array<i64: 1, 4, 256>}, {pipeline_mode = #tpu.pipeline_mode<synchronous>, transform_indices = @transform_1, window_bounds = array<i64: 1, 4, 1>}, {transform_indices = @transform_2, window_bounds = array<i64: 1, 4, 256>}]} {
    %c0 = arith.constant 0 : index
    %c0_0 = arith.constant 0 : index
    %c0_1 = arith.constant 0 : index
    %0 = vector.load %arg2[%c0, %c0_0, %c0_1] : memref<1x4x256xf32, #tpu.memory_space<vmem>>, vector<1x4x256xf32>
    %cst = arith.constant dense<0.000000e+00> : vector<1x256xf32>
    %1 = vector.multi_reduction <add>, %0, %cst [1] : vector<1x4x256xf32> to vector<1x256xf32>
    %2 = vector.shape_cast %1 : vector<1x256xf32> to vector<1x1x256xf32>
    %cst_2 = arith.constant 2.500000e-01 : f32
    %3 = vector.broadcast %cst_2 : f32 to vector<1x1x256xf32>
    %4 = arith.mulf %2, %3 : vector<1x1x256xf32>
    %5 = vector.broadcast %4 : vector<1x1x256xf32> to vector<1x4x256xf32>
    %6 = arith.subf %0, %5 : vector<1x4x256xf32>
    %7 = arith.mulf %6, %6 : vector<1x4x256xf32>
    %cst_3 = arith.constant dense<0.000000e+00> : vector<1x256xf32>
    %8 = vector.multi_reduction <add>, %7, %cst_3 [1] : vector<1x4x256xf32> to vector<1x256xf32>
    %9 = vector.shape_cast %8 : vector<1x256xf32> to vector<1x1x256xf32>
    %cst_4 = arith.constant 2.500000e-01 : f32
    %10 = vector.broadcast %cst_4 : f32 to vector<1x1x256xf32>
    %11 = arith.mulf %9, %10 : vector<1x1x256xf32>
    %c0_5 = arith.constant 0 : index
    %c0_6 = arith.constant 0 : index
    %c0_7 = arith.constant 0 : index
    %12 = vector.load %arg3[%c0_5, %c0_6, %c0_7] : memref<1x4x1xf32, #tpu.memory_space<vmem>>, vector<1x4x1xf32>
    %cst_8 = arith.constant 9.99999974E-6 : f32
    %13 = vector.broadcast %cst_8 : f32 to vector<1x1x256xf32>
    %14 = arith.addf %11, %13 : vector<1x1x256xf32>
    %15 = math.rsqrt %14 : vector<1x1x256xf32>
    %16 = vector.broadcast %15 : vector<1x1x256xf32> to vector<1x4x256xf32>
    %17 = arith.mulf %6, %16 : vector<1x4x256xf32>
    %18 = vector.broadcast %12 : vector<1x4x1xf32> to vector<1x4x256xf32>
    %19 = arith.mulf %17, %18 : vector<1x4x256xf32>
    %c0_9 = arith.constant 0 : index
    %c0_10 = arith.constant 0 : index
    %c0_11 = arith.constant 0 : index
    %20 = vector.load %arg4[%c0_9, %c0_10, %c0_11] : memref<1x4x256xf32, #tpu.memory_space<vmem>>, vector<1x4x256xf32>
    tpu.vector_store %arg4[%c0_9, %c0_10, %c0_11], %19 {strides = array<i32>} : memref<1x4x256xf32, #tpu.memory_space<vmem>>, vector<1x4x256xf32>,
    return
  }
  func.func @transform_0(%arg0: i32, %arg1: i32) -> (i32, i32, i32) {
    %c0_i32 = arith.constant 0 : i32
    %c0_i32_0 = arith.constant 0 : i32
    return %arg0, %c0_i32, %arg1 : i32, i32, i32
  }
  func.func @transform_1(%arg0: i32, %arg1: i32) -> (i32, i32, i32) {
    %c0_i32 = arith.constant 0 : i32
    %c0_i32_0 = arith.constant 0 : i32
    %c0_i32_1 = arith.constant 0 : i32
    %c0_i32_2 = arith.constant 0 : i32
    return %c0_i32, %c0_i32_0, %c0_i32_1 : i32, i32, i32
  }
  func.func @transform_2(%arg0: i32, %arg1: i32) -> (i32, i32, i32) {
    %c0_i32 = arith.constant 0 : i32
    %c0_i32_0 = arith.constant 0 : i32
    return %arg0, %c0_i32, %arg1 : i32, i32, i32
  }
}

</mosaic_0001>

<bundles_post_ra>
// kernel: tpu_custom_call.1
= control target key start
LH: loop header
LB: loop body
LE: loop exit
PB: predicated region body
PF: predicated region fallthrough
CT: control target
= control target key end

     0   :  { %7 = vsyncpa [#allocation3], 0  ;;  %s712_s0 = inlined_call_operand.hbm [shape: f32[2,4,256], index: 0, kind: input, shape index: {}]   ;;  %s713_s1 = inlined_call_operand.vmem [shape: f32[1,4,1], index: 1, kind: input, shape index: {}]   ;;  %s714_s2 = inlined_call_operand.hbm [shape: f32[2,4,256], index: 2, kind: output, shape index: {}]  }
   0x1   :  { %9 = vsyncpa [#allocation3 + $0x1], 0 }
   0x2   :  { %10 = vsyncpa [#allocation4], 0 }
   0x3   :  { %12 = vsyncpa [#allocation4 + $0x1], 0  ;;  %s567_s9 = smov 0   ;;  %s569_s10 = smov 0  }
   0x4   :  { %s571_s11 = smov 0   ;;  %s573_s12 = smov 0  }
   0x5   :  { %s575_s13 = smov 0   ;;  %s577_s14 = smov 0  }
   0x6 LB: > { %s351_s15 = sadd.s32 4294967295, %s546_s14   ;;  %s352_s16 = sadd.s32 4294967294, %s546_s14   ;;  %s546_s14 = sphi %s577_s14, %s18_s14   ;;  %s542_s13 = sphi %s575_s13, %s726_s13   ;;  %s538_s12 = sphi %s573_s12, %s725_s12   ;;  %s534_s11 = sphi %s571_s11, %s724_s11   ;;  %s530_s10 = sphi %s569_s10, %s723_s10   ;;  %s526_s9 = sphi %s567_s9, %s722_s9  }
   0x7   : > { %s30_s17 = sadd.s32 1, %s542_s13  ;;  %s39_s18 = sadd.s32 1, %s534_s11 }
   0x8   : > { %p32_p0 = scmp.ge.s32.totalorder %s30_s17, 2  ;;  %p46_p1 = scmp.ne.s32.totalorder %s534_s11, %s530_s10 }
   0x9   : > { %p47_p2 = scmp.eq.s32.totalorder %s546_s14, 0  ;;  %p52_p3 = scmp.ne.s32.totalorder %s530_s10, %s526_s9 }
   0xa   : > { %s728_s17 = smov (%p32_p0, %s30_s17), 0  ;;  %p53_p5 = scmp.eq.s32.totalorder %s351_s15, 0 }
   0xb   : > { %p608_p4 = por %p47_p2, %p46_p1  ;;  %s34_s20 = ssub.s32 %s542_s13, %s728_s17 }
   0xc   : > { %p99_p6 = scmp.eq.s32.totalorder %s351_s15, 1  ;;  %p37_p7 = scmp.eq.s32.totalorder %s34_s20, 0 }
   0xd   : > { %p614_p8 = por %p53_p5, %p52_p3  ;;  %p105_p10 = scmp.eq.s32.totalorder %s352_s16, 1 }
   0xe   : > { %p618_p9 = por %p99_p6, %p46_p1  ;;  %p380_p13 = scmp.lt.s32.totalorder %s546_s14, 2 }
   0xf   : > { %s623_s23 = scalar_select %p37_p7, %s534_s11, %s39_s18  }
  0x10   : > { %p625_p11 = por %p105_p10, %p52_p3  ;;  %s128_s25 = sand.u32 1, %s534_s11  }
  0x11   : > { %s355_s26 = sshll.u32 %s128_s25, 3  ;;  %s366_s27 = sshll.u32 %s542_s13, 7 }
  0x12   : > { %s718_s24 = scalar_select %p625_p11, 1, 0 }
  0x13   : > { %s140_s30 = scalar_lea.hbm %s712_s0, %s366_s27  ;;  %s132_s3 = scalar_lea.vmem [#allocation2], %s355_s26 }
  0x14   : > { %s142_s4 = sshll.u32 %s132_s3, 4  ;;  %p638_p0 = pnand %p380_p13, %p608_p4  ;;  %s143_s4 = int_to_ptr.vmem [resolvable:$true] %s142_s4 }
  0x15   : > { %p358_p1 = scmp.ge.s32.totalorder %s546_s14, 1  ;;  %p147_p2 = scmp.lt.s32.totalorder %s546_s14, 3 }
  0x16   : > { %s129_s6 = scalar_lea.sflag [#allocation3], %s128_s25  ;;  %p440_p3 = pneg %p638_p0 }
  0x17   : > { %s451_s7 = scalar_lea.vmem %s143_s4, 128  ;;  %s548_s8 = smov [#allocation2]  }
  0x18   : > { %p452_p5 = scmp.ne.s32.totalorder %s143_s4, %s451_s7  ;;  %s456_s15 = sshll.u32 %s548_s8, 4  ;;  %s457_s15 = int_to_ptr.vmem [resolvable:$false] %s456_s15 }
  0x19   : > { %s458_s16 = scalar_lea.vmem %s457_s15, 256  ;;  %p459_p10 = scmp.lt.s32.totalorder %s143_s4, %s457_s15 }
  0x1a   : > { %p454_p6 = pnand %p452_p5, %p440_p3  ;;  %p460_p12 = scmp.lt.s32.totalorder %s458_s16, %s451_s7 }
  0x1c   : > { %p455_p7 = pneg %p454_p6  ;;  %p461_p4 = por %p460_p12, %p459_p10 }
  0x1e   : > { %p462_p13 = pnand %p461_p4, %p455_p7 }
  0x20   : > { %465 = shalt.err (!%p462_p13)
}
  0x21   : > { %375 = dma.hbm_to_vmem [thread:$0]  (!%p638_p0), %s140_s30, 128, %s143_s4, %s129_s6  }
  0x22   : > { %p148_p11 = pnand %p358_p1, %p147_p2 }
  0x23   : > { %s653_s18 = sand.u32 (!%p148_p11), 1, %s530_s10  }
  0x24   : > { %151 = sbr.rel (%p148_p11) target bundleno = 185 (0xb9), region = 28  ;;  %s359_s19 = sshll.u32 (!%p148_p11), %s653_s18, 3 }
  0x25   : > { %s154_s20 = scalar_lea.sflag (!%p148_p11), [#allocation3], %s653_s18  ;;  %s157_s25 = scalar_lea.vmem (!%p148_p11), [#allocation2], %s359_s19 }
  0x29   : > { %517 = dma.done.wait (%p614_p8), %s154_s20, 128  }
  0x2a   : > { %519 = vsyncadd (%p614_p8), %s154_s20, 4294967168  ;;  %v549_v0 = vmov 0   ;;  %v226_v1 = vld [vmem:[%s713_s1] sm:$0xf]  ;;  %vm184_vm0 = vcmask 1043456   ;;  %v243_v44 = vlaneseq  ;;  %s367_s21 = sshll.u32 %s538_s12, 7 }
  0x2b   : > { %432 = vset.pattern.permute.xlu0 %v549_v0  ;;  %v180_v2 = vld [vmem:[%s157_s25] sm:$0xff]  ;;  %v550_v42 = vmov 839922192   ;;  %s177_s28 = scalar_lea.vmem [#allocation5], %s359_s19  ;;  %s265_s4 = scalar_lea.hbm %s714_s2, %s367_s21 }
  0x2c   : > { %238 = vperm.xlu0 %432, %v226_v1   ;;  %v182_v3 = vcombine.high %v180_v2, %v180_v2  ;;  %v185_v4 = vsel %vm184_vm0, %v180_v2, 0.0  ;;  %v241_v43 = vunpack.c.l.s4 %v550_v42  ;;  %v244_v48 = vshrl.u32 %v243_v44, 7  ;;  %s267_s29 = sshll.u32 %s177_s28, 4  ;;  %s251_s5 = scalar_lea.sflag [#allocation4], %s653_s18  ;;  %s268_s29 = int_to_ptr.vmem [resolvable:$true] %s267_s29 }
  0x2d   : > { %v186_v6 = vrot.slane %v185_v4, 4  ;;  %s466_s6 = scalar_lea.vmem %s268_s29, 128  ;;  %s551_s7 = smov [#allocation5]  }
  0x2e   : > { %v192_v5 = vsel %vm184_vm0, %v182_v3, 0.0  ;;  %v242_v47 = vunpack.c.0.s8 %v241_v43  ;;  %p467_p8 = scmp.ne.s32.totalorder %s268_s29, %s466_s6  ;;  %s470_s8 = sshll.u32 %s551_s7, 4  ;;  %s471_s8 = int_to_ptr.vmem [resolvable:$false] %s470_s8 }
  0x2f   : > { %v193_v7 = vrot.slane %v192_v5, 4  ;;  %v187_v8 = vadd.f32 %v186_v6, %v185_v4  ;;  %s472_s12 = scalar_lea.vmem %s471_s8, 256  ;;  %p473_p0 = scmp.lt.s32.totalorder %s268_s29, %s471_s8 }
  0x30   : > { %v245_v50 = vsub.s32 %v242_v47, %v244_v48  ;;  %p468_p11 = pnand %p467_p8, %p618_p9  ;;  %p474_p1 = scmp.lt.s32.totalorder %s472_s12, %s466_s6 }
  0x31   : > { %v194_v9 = vadd.f32 %v193_v7, %v192_v5  ;;  %v188_v10 = vrot.slane %v187_v8, 2 }
  0x32   : > { %p469_p12 = pneg %p468_p11  ;;  %p475_p2 = por %p474_p1, %p473_p0 }
  0x33   : > { %v195_v11 = vrot.slane %v194_v9, 2  ;;  %v189_v12 = vadd.f32 %v188_v10, %v187_v8 }
  0x34   : > { %p476_p3 = pnand %p475_p2, %p469_p12 }
  0x35   : > { %v196_v13 = vadd.f32 %v195_v11, %v194_v9  ;;  %v190_v14 = vrot.slane %v189_v12, 1 }
  0x37   : > { %v197_v15 = vrot.slane %v196_v13, 1  ;;  %v191_v16 = vadd.f32 %v190_v14, %v189_v12 }
  0x39   : > { %v198_v17 = vadd.f32 %v197_v15, %v196_v13  ;;  %v199_v18 = vmul.f32 0.25, %v191_v16 }
  0x3b   : > { %v200_v19 = vmul.f32 0.25, %v198_v17 }
  0x3d   : > { %v203_v20 = vcombine.low %v199_v18, %v200_v19 }
  0x3f   : > { %v205_v21 = vsub.f32 %v180_v2, %v203_v20 }
  0x41   : > { %v206_v22 = vmul.f32 %v205_v21, %v205_v21 }
  0x43   : > { %v208_v23 = vcombine.high %v206_v22, %v206_v22  ;;  %v210_v24 = vsel %vm184_vm0, %v206_v22, 0.0 }
  0x44   : > { %v211_v26 = vrot.slane %v210_v24, 4 }
  0x45   : > { %v217_v25 = vsel %vm184_vm0, %v208_v23, 0.0 }
  0x46   : > { %v218_v27 = vrot.slane %v217_v25, 4  ;;  %v212_v28 = vadd.f32 %v211_v26, %v210_v24 }
  0x48   : > { %v219_v29 = vadd.f32 %v218_v27, %v217_v25  ;;  %v213_v30 = vrot.slane %v212_v28, 2 }
  0x4a   : > { %v220_v31 = vrot.slane %v219_v29, 2  ;;  %v214_v32 = vadd.f32 %v213_v30, %v212_v28 }
  0x4c   : > { %v221_v33 = vadd.f32 %v220_v31, %v219_v29  ;;  %v215_v34 = vrot.slane %v214_v32, 1 }
  0x4e   : > { %v222_v35 = vrot.slane %v221_v33, 1  ;;  %v216_v36 = vadd.f32 %v215_v34, %v214_v32 }
  0x50   : > { %v223_v37 = vadd.f32 %v222_v35, %v221_v33  ;;  %v224_v38 = vmul.f32 0.25, %v216_v36 }
  0x52   : > { %v225_v39 = vmul.f32 0.25, %v223_v37  ;;  %v227_v40 = vadd.f32 1e-05, %v224_v38 }
  0x54   : > { %v228_v41 = vadd.f32 1e-05, %v225_v39  ;;  %434 = vrsqrt.f32 %v227_v40 }
  0x56   : > { %436 = vrsqrt.f32 %v228_v41 }
  0x61   : > { %v435_v45 = vpop.eup %434 }
  0x63   : > { %v437_v46 = vpop.eup %436 }
  0x64   : > { %v233_v49 = vcombine.low %v435_v45, %v437_v46 }
  0x66   : > { %v235_v51 = vmul.f32 %v233_v49, %v205_v21 }
  0xa7   : > { %v239_v52 = vpop.permute.xlu0 %238 }
  0xa8   : > { %v246_v53 = vrot.slane %v239_v52, %v245_v50 }
  0xaa   : > { %v248_v54 = vmul.f32 %v246_v53, %v235_v51 }
  0xac   : > { %249 = vst [vmem:[%s177_s28] sm:$0xff] %v248_v54 }
  0xad   : > { %479 = shalt.err (!%p476_p3)
}
  0xae   : > { %s480_s15 = scalar_lea.hbm %s265_s4, 128  ;;  %s484_s19 = scalar_lea.hbm %s714_s2, 256 }
  0xaf   : > { %p481_p5 = scmp.ne.s32.totalorder %s265_s4, %s480_s15  ;;  %p485_p10 = scmp.lt.s32.totalorder %s265_s4, %s714_s2 }
  0xb0   : > { %p486_p4 = scmp.lt.s32.totalorder %s484_s19, %s480_s15 }
  0xb1   : > { %p482_p6 = pnand %p481_p5, %p618_p9 }
  0xb2   : > { %p487_p13 = por %p486_p4, %p485_p10 }
  0xb3   : > { %p483_p7 = pneg %p482_p6 }
  0xb5   : > { %p488_p8 = pnand %p487_p13, %p483_p7 }
  0xb7   : > { %491 = shalt.err (!%p488_p8)
}
  0xb8   : > { %370 = dma.vmem_to_hbm [thread:$0]  (%p618_p9), %s268_s29, 128, %s265_s4, %s251_s5  }
  0xb9 PF: > { %s279_s26 = sand.u32 1, %s526_s9   ;;  %p720_p11 = scmp.ne.s32.totalorder %s718_s24, 0 }
  0xba   : > { %p721_p12 = scmp.ge.s32.totalorder %s546_s14, 2  ;;  %s280_s27 = scalar_lea.sflag [#allocation4], %s279_s26 }
  0xbc   : > { %p377_p0 = pnand %p721_p12, %p720_p11 }
  0xbe   : > { %p378_p1 = pneg %p377_p0 }
  0xc0   : > { %521 = dma.done.wait (%p378_p1), %s280_s27, 128  }
  0xc1   : > { %523 = vsyncadd (%p378_p1), %s280_s27, 4294967168  ;;  %s18_s14 = sadd.s32 1, %s546_s14   ;;  %s722_s9 = smov %s530_s10 }
  0xc2   : > { %p15_p2 = scmp.ge.s32.totalorder %s18_s14, 4   ;;  %s723_s10 = smov %s534_s11 }
  0xc3   : > { %s724_s11 = smov %s623_s23  ;;  %s725_s12 = smov %s542_s13 }
  0xc4   : > { %s726_s13 = smov %s728_s17  ;;  %17 = sbr.rel (!%p15_p2) target bundleno = 6 (0x6), region = 73 }
  0xc9   :  { %285 = vsyncpa [#allocation3], 1 }
  0xca   :  { %287 = vsyncpa [#allocation3 + $0x1], 1 }
  0xcb   :  { %288 = vsyncpa [#allocation4], 1 }
  0xcc   :  { %290 = vsyncpa [#allocation4 + $0x1], 1 }

</bundles_post_ra>
